<compile_context>
chip_gen: v7x
topology: tpu7x:2x2x1
jax: 0.10.0
libtpu: 0.0.40
codegen_flags: <defaults>
</compile_context>

<pallas_src>
import functools

import jax
import jax.numpy as jnp
import numpy as np
from jax.experimental import pallas as pl
from jax.experimental.pallas import tpu as pltpu


# ----------------------------------------------------------------------------
# Helpers
# ----------------------------------------------------------------------------
def _round_up(x, m):
    return (x + m - 1) // m * m


def _pick_c_tile(B, C, HW, itemsize, budget_bytes=4 << 20):
    """Channel tile for the GAP kernel.

    Output blocks are (B, tile_c) with tile_c on lanes, so tile_c must be a
    multiple of 128 (or the full C).  Pick the largest multiple-of-128 divisor
    of C whose fmap slab (B * tile_c * HW * itemsize) fits the per-tile budget
    (double-buffered by BlockSpec)."""
    if C % 128 != 0:
        return C  # small / irregular channel count: single block
    bytes_per_c = max(1, B * HW * itemsize)
    max_tc = max(128, budget_bytes // bytes_per_c)
    best = 128
    tc = 128
    while tc <= min(C, max_tc):
        if C % tc == 0:
            best = tc
        tc += 128
    return best


def _pick_nc_tile(NC):
    """(padded_num_class, tile) — tile is a multiple of 128 so the score store
    is lane-dense; large class counts are split into 1024-wide column tiles
    (parallel grid axis, bounded w2 VMEM footprint on v7x)."""
    nc_pad = _round_up(NC, 128)
    if nc_pad <= 1024:
        return nc_pad, nc_pad
    tile = 1024
    return _round_up(nc_pad, tile), tile


# ----------------------------------------------------------------------------
# Kernel 1: global average pool, streamed over channel tiles.
# ----------------------------------------------------------------------------
def _gap_kernel(x_ref, feat_ref, *, inv_hw):
    # x_ref: (B, tile_c, H*W); reduce spatial axis with f32 accumulation
    # (avoids materializing an f32 copy of the whole tile when input is bf16).
    feat_ref[...] = jnp.sum(x_ref[...], axis=-1, dtype=jnp.float32) * inv_hw


@jax.jit
def _gap_forward(fmap):
    B, C, H, W = fmap.shape
    HW = H * W
    x = fmap.reshape(B, C, HW)  # free reshape, lane dim = H*W
    tile_c = _pick_c_tile(B, C, HW, fmap.dtype.itemsize)
    grid = (C // tile_c,)
    kernel = functools.partial(_gap_kernel, inv_hw=1.0 / float(HW))
    return pl.pallas_call(
        kernel,
        grid=grid,
        in_specs=[pl.BlockSpec((B, tile_c, HW), lambda j: (0, j, 0))],
        out_specs=pl.BlockSpec((B, tile_c), lambda j: (0, j)),
        out_shape=jax.ShapeDtypeStruct((B, C), jnp.float32),
        compiler_params=pltpu.CompilerParams(
            dimension_semantics=("parallel",)),
        cost_estimate=pl.CostEstimate(
            flops=B * C * HW,
            transcendentals=0,
            bytes_accessed=B * C * HW * fmap.dtype.itemsize + B * C * 4),
    )(x)


# ----------------------------------------------------------------------------
# Kernel 2: Linear -> folded BN (eval) -> ReLU -> classifier (column tiled).
# ----------------------------------------------------------------------------
def _head_kernel(feat_ref, w1_ref, b1_ref, s_ref, t_ref, w2_ref, b2_ref,
                 out_ref):
    feat = feat_ref[...]                                     # (B, C) f32
    # FC: MXU matmul in the weights' dtype (f32 here; bf16 if bf16 weights
    # are supplied), accumulate in f32.
    h = jnp.dot(feat.astype(w1_ref.dtype), w1_ref[...],
                preferred_element_type=jnp.float32)
    h = h + b1_ref[...].astype(jnp.float32)
    # Eval-mode BatchNorm1d folded into scale/shift, then ReLU (f32 VPU path).
    h = jnp.maximum(h * s_ref[...] + t_ref[...], 0.0)
    # Classifier column tile: (B, D1) @ (D1, tile_nc)
    scores = jnp.dot(h.astype(w2_ref.dtype), w2_ref[...],
                     preferred_element_type=jnp.float32)
    scores = scores + b2_ref[...].astype(jnp.float32)
    out_ref[...] = scores.astype(out_ref.dtype)


@jax.jit
def _head_forward(feat, w1, b1, bn_scale, bn_shift, w2, b2):
    B, C = feat.shape
    D1 = w1.shape[1]
    NC = w2.shape[1]
    NC_pad, tile_nc = _pick_nc_tile(NC)
    if NC_pad != NC:
        w2p = jnp.pad(w2, ((0, 0), (0, NC_pad - NC)))
        b2p = jnp.pad(b2, ((0, 0), (0, NC_pad - NC)))
    else:
        w2p, b2p = w2, b2
    grid = (NC_pad // tile_nc,)
    wbytes = w2.dtype.itemsize
    scores = pl.pallas_call(
        _head_kernel,
        grid=grid,
        in_specs=[
            pl.BlockSpec((B, C), lambda j: (0, 0)),
            pl.BlockSpec((C, D1), lambda j: (0, 0)),
            pl.BlockSpec((1, D1), lambda j: (0, 0)),
            pl.BlockSpec((1, D1), lambda j: (0, 0)),
            pl.BlockSpec((1, D1), lambda j: (0, 0)),
            pl.BlockSpec((D1, tile_nc), lambda j: (0, j)),
            pl.BlockSpec((1, tile_nc), lambda j: (0, j)),
        ],
        out_specs=pl.BlockSpec((B, tile_nc), lambda j: (0, j)),
        out_shape=jax.ShapeDtypeStruct((B, NC_pad), jnp.float32),
        compiler_params=pltpu.CompilerParams(
            dimension_semantics=("parallel",)),
        cost_estimate=pl.CostEstimate(
            flops=2 * B * C * D1 * grid[0] + 2 * B * D1 * NC_pad,
            transcendentals=0,
            bytes_accessed=(B * C * 4 + C * D1 * wbytes + 3 * D1 * 4
                            + D1 * NC_pad * wbytes + NC_pad * 4
                            + B * NC_pad * 4)),
    )(feat, w1, b1, bn_scale, bn_shift, w2p, b2p)
    return scores[:, :NC]


# ----------------------------------------------------------------------------
# Parameter construction (deterministic) + module-level wrapper.
# ----------------------------------------------------------------------------
def make_fblneck_params(key, num_class, planes, fc_dims=(512,), eps=1e-5):
    """Deterministic synthetic parameters.  Linear weights are stored already
    transposed to (in_features, out_features) for the kernel.  Eval-mode
    BatchNorm1d is folded into a per-feature scale/shift."""
    in_planes = planes[-1]
    d1 = fc_dims[-1]
    k = jax.random.split(key, 8)
    w1 = jax.random.normal(k[0], (in_planes, d1), jnp.float32) * 0.05
    b1 = jax.random.normal(k[1], (1, d1), jnp.float32) * 0.05
    gamma = 1.0 + 0.1 * jax.random.normal(k[2], (d1,), jnp.float32)
    beta = 0.1 * jax.random.normal(k[3], (d1,), jnp.float32)
    run_mean = 0.1 * jax.random.normal(k[4], (d1,), jnp.float32)
    run_var = jnp.abs(1.0 + 0.1 * jax.random.normal(k[5], (d1,), jnp.float32))
    w2 = jax.random.normal(k[6], (d1, num_class), jnp.float32) * 0.05
    b2 = 0.05 * jax.random.normal(k[7], (1, num_class), jnp.float32)
    inv_std = 1.0 / jnp.sqrt(run_var + eps)
    bn_scale = (gamma * inv_std)[None, :]
    bn_shift = (beta - run_mean * gamma * inv_std)[None, :]
    return dict(w1=w1, b1=b1, bn_scale=bn_scale, bn_shift=bn_shift,
                w2=w2, b2=b2)


def fbl_neck_forward(x_list, params, training=False, classification=False):
    """Mirrors FBLNeck.forward: x_list is a list of feature maps, last used.
    The classifier kernel (and its w2 DMA) is skipped entirely on the
    feature-only eval path."""
    fmap3 = x_list[-1]
    global_feat = _gap_forward(fmap3)
    if training or classification:
        global_scores = _head_forward(
            global_feat, params["w1"], params["b1"], params["bn_scale"],
            params["bn_shift"], params["w2"], params["b2"])
    if training:
        return [[global_scores, global_feat]]
    elif classification:
        return [global_scores]
    else:
        return global_feat


# ----------------------------------------------------------------------------
# Reference (pure JAX) for a correctness check.
# ----------------------------------------------------------------------------
def _reference(fmap, p):
    feat = jnp.mean(fmap.astype(jnp.float32), axis=(2, 3))
    h = feat @ p["w1"] + p["b1"]
    h = jnp.maximum(h * p["bn_scale"] + p["bn_shift"], 0.0)
    scores = h @ p["w2"] + p["b2"]
    return feat, scores


if __name__ == "__main__":
    # Small shapes consistent with the module:
    # planes[-1] = 4 channels, spatial 16x16, batch 2, fc_dims=[32], 8 classes.
    B, C, H, W = 2, 4, 16, 16
    num_class, fc_dims = 8, (32,)

    key = jax.random.PRNGKey(0)
    kx, kp = jax.random.split(key)
    x = jax.random.normal(kx, (B, C, H, W), jnp.float32)
    params = make_fblneck_params(kp, num_class=num_class,
                                 planes=[64, 128, C], fc_dims=fc_dims)

    # classification=True path exercises the full hot path (GAP+FC+BN+ReLU+cls).
    out = fbl_neck_forward([x], params, training=False, classification=True)
    scores = jax.block_until_ready(out[0])

    # Eval-default path (returns pooled feature only; classifier kernel skipped).
    feat = jax.block_until_ready(fbl_neck_forward([x], params))

    # Training-structured return (eval-mode BN stats, dropout=0).
    tr = fbl_neck_forward([x], params, training=True)
    jax.block_until_ready(tr[0][0])

    ref_feat, ref_scores = _reference(x, params)
    np.testing.assert_allclose(np.asarray(feat), np.asarray(ref_feat),
                               rtol=1e-5, atol=1e-5)
    np.testing.assert_allclose(np.asarray(scores), np.asarray(ref_scores),
                               rtol=1e-5, atol=1e-5)
    np.testing.assert_allclose(np.asarray(tr[0][1]), np.asarray(ref_feat),
                               rtol=1e-5, atol=1e-5)
    print("KERNEL_OK")
</pallas_src>

<mosaic_0001>
module attributes {stable_mosaic.version = 11 : i64} {
  func.func @_gap_kernel(%arg0: i32, %arg1: memref<2x4x256xf32, #tpu.memory_space<vmem>>, %arg2: memref<2x4xf32, #tpu.memory_space<vmem>>) attributes {dimension_semantics = [#tpu.dimension_semantics<parallel>], iteration_bounds = array<i64: 1>, scalar_prefetch = 0 : i64, scratch_operands = 0 : i64, tpu.core_type = #tpu.core_type<tc>, window_params = [{transform_indices = @transform_0, window_bounds = array<i64: 2, 4, 256>}, {transform_indices = @transform_1, window_bounds = array<i64: 2, 4>}]} {
    %c0 = arith.constant 0 : index
    %c0_0 = arith.constant 0 : index
    %c0_1 = arith.constant 0 : index
    %0 = vector.load %arg1[%c0, %c0_0, %c0_1] : memref<2x4x256xf32, #tpu.memory_space<vmem>>, vector<2x4x256xf32>
    %cst = arith.constant dense<0.000000e+00> : vector<2x4xf32>
    %1 = vector.multi_reduction <add>, %0, %cst [2] : vector<2x4x256xf32> to vector<2x4xf32>
    %cst_2 = arith.constant 3.906250e-03 : f32
    %2 = vector.broadcast %cst_2 : f32 to vector<2x4xf32>
    %3 = arith.mulf %1, %2 : vector<2x4xf32>
    %c0_3 = arith.constant 0 : index
    %c0_4 = arith.constant 0 : index
    %4 = vector.load %arg2[%c0_3, %c0_4] : memref<2x4xf32, #tpu.memory_space<vmem>>, vector<2x4xf32>
    tpu.vector_store %arg2[%c0_3, %c0_4], %3 {strides = array<i32>} : memref<2x4xf32, #tpu.memory_space<vmem>>, vector<2x4xf32>,
    return
  }
  func.func @transform_0(%arg0: i32) -> (i32, i32, i32) {
    %c0_i32 = arith.constant 0 : i32
    %c0_i32_0 = arith.constant 0 : i32
    %c0_i32_1 = arith.constant 0 : i32
    return %c0_i32, %arg0, %c0_i32_0 : i32, i32, i32
  }
  func.func @transform_1(%arg0: i32) -> (i32, i32) {
    %c0_i32 = arith.constant 0 : i32
    %c0_i32_0 = arith.constant 0 : i32
    return %c0_i32, %arg0 : i32, i32
  }
}

</mosaic_0001>

<bundles_post_ra>
// kernel: _gap_forward.1
= control target key start
LH: loop header
LB: loop body
LE: loop exit
PB: predicated region body
PF: predicated region fallthrough
CT: control target
= control target key end

     0   :  { %vm17_vm0 = vcmask 1043456   ;;  %s117_s0 = inlined_call_operand.vmem [shape: f32[2,4,256], index: 0, kind: input, shape index: {}]   ;;  %s118_s1 = inlined_call_operand.hbm [shape: f32[2,4], index: 1, kind: output, shape index: {}]  }
   0x1   :  { %v9_v0 = vld [vmem:[%s117_s0] sm:$0xff]  ;;  %v10_v1 = vld [vmem:[%s117_s0 + $0x8] sm:$0xff] }
   0x2   :  { %6 = vsyncpa [#allocation3], 0  ;;  %v13_v2 = vcombine.high %v9_v0, %v9_v0  ;;  %v18_v3 = vsel %vm17_vm0, %v9_v0, 0.0  ;;  %v14_v4 = vcombine.high %v10_v1, %v10_v1  ;;  %v23_v6 = vsel %vm17_vm0, %v10_v1, 0.0  ;;  %s88_s0 = smov [#allocation2]  }
   0x3   :  { %v32_v10 = vlaneseq  ;;  %s53_s10 = sshll.u32 %s88_s0, 4  ;;  %vm42_vm1 = vcmask 1041409   ;;  %vm45_vm2 = vcmask 25600   ;;  %s54_s10 = int_to_ptr.vmem [resolvable:$true] %s53_s10 }
   0x4   :  { %v19_v5 = vsel %vm17_vm0, %v13_v2, 0.0  ;;  %v24_v7 = vsel %vm17_vm0, %v14_v4, 0.0  ;;  %s64_s11 = scalar_lea.vmem %s54_s10, 32  ;;  %p69_p1 = scmp.lt.s32.totalorder %s54_s10, %s54_s10 }
   0x5   :  { %v20_v8 = vadd.f32 %v19_v5, %v18_v3  ;;  %v25_v9 = vadd.f32 %v24_v7, %v23_v6  ;;  %v33_v11 = vand.u32 127, %v32_v10  ;;  %v35_v12 = vshrl.u32 %v32_v10, 7  ;;  %p65_p0 = scmp.ne.s32.totalorder %s54_s10, %s64_s11  ;;  %p70_p2 = scmp.lt.s32.totalorder %s64_s11, %s64_s11 }
   0x7   :  { %21 = vadd.xlane.f32.xlu0 %v20_v8  ;;  %v36_v14 = vsub.s32 %v33_v11, %v35_v12  ;;  %p71_p3 = por %p70_p2, %p69_p1 }
   0x9   :  { %p72_p4 = pnand %p71_p3, %p65_p0 }
   0xb   :  { %26 = vadd.xlane.f32.xlu0 %v25_v9 }
  0x94   :  { %v22_v13 = vpop.xlane.xlu0 %21 }
  0x95   :  { %v28_v15 = vmul.f32 0.00390625, %v22_v13 }
  0x97   :  { %v37_v18 = vrot.slane %v28_v15, %v36_v14 }
  0x98   :  { %v27_v16 = vpop.xlane.xlu0 %26 }
  0x99   :  { %v29_v17 = vmul.f32 0.00390625, %v27_v16 }
  0x9b   :  { %v41_v19 = vrot.slane %v29_v17, %v36_v14 }
  0x9d   :  { %v43_v20 = vsel %vm42_vm1, %v41_v19, %v37_v18 }
  0x9e   :  { %46 = vst.msk [vmem:[#allocation2] sm:$0x3] %vm45_vm2, %v43_v20 }
  0x9f   :  { %75 = shalt.err (!%p72_p4)
}
  0xa0   :  { %s76_s14 = scalar_lea.hbm %s118_s1, 32 }
  0xa1   :  { %p77_p5 = scmp.ne.s32.totalorder %s118_s1, %s76_s14  ;;  %p80_p6 = scmp.lt.u32.totalorder %s76_s14, %s118_s1 }
  0xa3   :  { %p82_p7 = pnand %p80_p6, %p77_p5 }
  0xa5   :  { %85 = shalt.err (!%p82_p7)
}
  0xa6   :  { %56 = dma.vmem_to_hbm [thread:$0]  %s54_s10, 32, %s118_s1, [#allocation3]  }
  0xa7   :  { %86 = dma.done.wait [#allocation3], 32  }
  0xa8   :  { %87 = vsyncadd [#allocation3], 4294967264 }
  0xa9   :  { %60 = vsyncpa [#allocation3], 1 }

</bundles_post_ra>
